<compile_context>
chip_gen: v7x
topology: tpu7x:2x2x1
jax: 0.10.0
libtpu: 0.0.40
codegen_flags: <defaults>
</compile_context>

<pallas_src>
import jax
import jax.numpy as jnp
from jax.experimental import pallas as pl
from jax.experimental.pallas import tpu as pltpu

WINDOW = 5   # fixed by the model: x is (N, 5)
LANE = 128   # TPU lane width; pad n_class up to this for dense stores


def _ner_kernel(ids_ref, t0_ref, t1_ref, t2_ref, t3_ref, t4_ref, b_ref, out_ref):
    # ids_ref: (N_pad*5,) int32 in SMEM -- only consumed by the index_maps.
    # tX_ref:  (1, 1, C_pad) gathered folded-table row for window X of sample j.
    # b_ref:   (1, C_pad)    lane-padded bias, resident (constant index_map).
    # out_ref: (TILE_N, C_pad) output tile, resident across the row axis.
    del ids_ref
    j = pl.program_id(1)  # row within the current N-tile
    row = (b_ref[...]
           + t0_ref[0] + t1_ref[0] + t2_ref[0] + t3_ref[0] + t4_ref[0])
    out_ref[pl.ds(j, 1), :] = row  # (1, 128) lane-dense store


def fold_params(emb_table, lin_w, lin_b):
    """One-time prep (NOT in the per-call hot path): fold linear into the table.

    Returns five (V, 1, C_pad) per-window tables and a (1, C_pad) bias.
    """
    v, e = emb_table.shape
    c = lin_w.shape[0]
    c_pad = LANE * ((c + LANE - 1) // LANE)
    # lin_w[c, w*E + e] -> [c, w, e]; folded[w, v, c] = sum_e emb[v, e] * lin_w[c, w*E + e]
    w3 = lin_w.reshape(c, WINDOW, e)
    folded = jnp.einsum("ve,cwe->wvc", emb_table, w3)          # (5, V, C)
    folded = jnp.pad(folded, ((0, 0), (0, 0), (0, c_pad - c)))  # lane-pad C -> 128
    tables = tuple(folded[w].reshape(v, 1, c_pad) for w in range(WINDOW))
    bias = jnp.pad(lin_b, (0, c_pad - c)).reshape(1, c_pad)
    return tables, bias


def ner_forward(x, tables, bias, n_class, *, tile_n=256):
    """x: (N, 5) int ids; tables: 5 x (V, 1, C_pad); bias: (1, C_pad)."""
    n = x.shape[0]
    v = tables[0].shape[0]
    c_pad = bias.shape[1]

    if n <= tile_n:
        tile_n = n                      # single full-height tile
    n_pad = tile_n * pl.cdiv(n, tile_n)  # pad N to a multiple of the tile

    # Token ids -> flat SMEM scalar-prefetch operand (row-major over (n, window)).
    # Clamp to the table range: a DMA gather has no OOB check (nn.Embedding
    # would raise); clamping is a no-op for valid ids.
    ids = jnp.clip(x.astype(jnp.int32), 0, v - 1).reshape(-1)
    if n_pad != n:
        ids = jnp.pad(ids, (0, (n_pad - n) * WINDOW))  # padded rows gather row 0

    grid = (n_pad // tile_n, tile_n)

    def table_map(w):
        # Data-dependent row gather: block size 1 along V => block index == row id.
        return lambda i, j, ids_ref, w=w: (ids_ref[(i * tile_n + j) * WINDOW + w], 0, 0)

    in_specs = [pl.BlockSpec((1, 1, c_pad), table_map(w)) for w in range(WINDOW)]
    in_specs.append(pl.BlockSpec((1, c_pad), lambda i, j, ids_ref: (0, 0)))  # bias

    out = pl.pallas_call(
        _ner_kernel,
        out_shape=jax.ShapeDtypeStruct((n_pad, c_pad), jnp.float32),
        grid_spec=pltpu.PrefetchScalarGridSpec(
            num_scalar_prefetch=1,
            grid=grid,
            in_specs=in_specs,
            out_specs=pl.BlockSpec((tile_n, c_pad), lambda i, j, ids_ref: (i, 0)),
        ),
        compiler_params=pltpu.CompilerParams(
            dimension_semantics=("parallel", "arbitrary")),
    )(ids, *tables, bias)

    return out[:n, :n_class]


def _reference(x, emb_table, lin_w, lin_b):
    """Pure-JAX reference matching the PyTorch forward."""
    emb = jnp.take(emb_table, x, axis=0)          # (N, 5, E)
    flat = emb.reshape(x.shape[0], -1)            # (N, 5*E)
    return flat @ lin_w.T + lin_b                 # (N, C)


if __name__ == "__main__":
    # Small, module-consistent shapes.
    N = 8           # batch of 5-token windows
    VOCAB = 64      # vocab_size
    EMB = 50        # emb_size (PyTorch default in __init__)
    NCLASS = 9      # n_class

    key = jax.random.PRNGKey(0)
    k_tok, k_emb, k_w, k_b = jax.random.split(key, 4)

    # Deterministic synthetic parameters (same shapes as nn.Embedding / nn.Linear).
    x = jax.random.randint(k_tok, (N, WINDOW), 0, VOCAB, dtype=jnp.int32)
    emb_table = jax.random.normal(k_emb, (VOCAB, EMB), dtype=jnp.float32)
    fan_in = WINDOW * EMB
    bound = 1.0 / (fan_in ** 0.5)
    lin_w = jax.random.uniform(k_w, (NCLASS, fan_in), jnp.float32, -bound, bound)
    lin_b = jax.random.uniform(k_b, (NCLASS,), jnp.float32, -bound, bound)

    # One-time fold (hoisted out of the forward hot path).
    tables, bias = fold_params(emb_table, lin_w, lin_b)

    out = jax.block_until_ready(ner_forward(x, tables, bias, NCLASS))
    ref = _reference(x, emb_table, lin_w, lin_b)

    assert out.shape == (N, NCLASS), out.shape
    assert jnp.allclose(out, ref, atol=1e-4, rtol=1e-4), "mismatch vs reference"
    print("KERNEL_OK")
</pallas_src>

<mosaic_0001>
module attributes {stable_mosaic.version = 11 : i64} {
  func.func @_ner_kernel(%arg0: i32, %arg1: i32, %arg2: memref<40xi32, #tpu.memory_space<smem>>, %arg3: memref<1x1x128xf32, #tpu.memory_space<vmem>>, %arg4: memref<1x1x128xf32, #tpu.memory_space<vmem>>, %arg5: memref<1x1x128xf32, #tpu.memory_space<vmem>>, %arg6: memref<1x1x128xf32, #tpu.memory_space<vmem>>, %arg7: memref<1x1x128xf32, #tpu.memory_space<vmem>>, %arg8: memref<1x128xf32, #tpu.memory_space<vmem>>, %arg9: memref<8x128xf32, #tpu.memory_space<vmem>>) attributes {dimension_semantics = [#tpu.dimension_semantics<parallel>, #tpu.dimension_semantics<arbitrary>], iteration_bounds = array<i64: 1, 8>, scalar_prefetch = 1 : i64, scratch_operands = 0 : i64, tpu.core_type = #tpu.core_type<tc>, window_params = [{transform_indices = @transform_0, window_bounds = array<i64: 1, 1, 128>}, {transform_indices = @transform_1, window_bounds = array<i64: 1, 1, 128>}, {transform_indices = @transform_2, window_bounds = array<i64: 1, 1, 128>}, {transform_indices = @transform_3, window_bounds = array<i64: 1, 1, 128>}, {transform_indices = @transform_4, window_bounds = array<i64: 1, 1, 128>}, {pipeline_mode = #tpu.pipeline_mode<synchronous>, transform_indices = @transform_5, window_bounds = array<i64: 1, 128>}, {transform_indices = @transform_6, window_bounds = array<i64: 8, 128>}]} {
    %c0 = arith.constant 0 : index
    %c0_0 = arith.constant 0 : index
    %0 = vector.load %arg8[%c0, %c0_0] : memref<1x128xf32, #tpu.memory_space<vmem>>, vector<1x128xf32>
    %c0_1 = arith.constant 0 : index
    %c0_2 = arith.constant 0 : index
    %c0_3 = arith.constant 0 : index
    %1 = vector.load %arg3[%c0_1, %c0_2, %c0_3] : memref<1x1x128xf32, #tpu.memory_space<vmem>>, vector<1x1x128xf32>
    %2 = vector.shape_cast %1 : vector<1x1x128xf32> to vector<1x128xf32>
    %3 = arith.addf %0, %2 : vector<1x128xf32>
    %c0_4 = arith.constant 0 : index
    %c0_5 = arith.constant 0 : index
    %c0_6 = arith.constant 0 : index
    %4 = vector.load %arg4[%c0_4, %c0_5, %c0_6] : memref<1x1x128xf32, #tpu.memory_space<vmem>>, vector<1x1x128xf32>
    %5 = vector.shape_cast %4 : vector<1x1x128xf32> to vector<1x128xf32>
    %6 = arith.addf %3, %5 : vector<1x128xf32>
    %c0_7 = arith.constant 0 : index
    %c0_8 = arith.constant 0 : index
    %c0_9 = arith.constant 0 : index
    %7 = vector.load %arg5[%c0_7, %c0_8, %c0_9] : memref<1x1x128xf32, #tpu.memory_space<vmem>>, vector<1x1x128xf32>
    %8 = vector.shape_cast %7 : vector<1x1x128xf32> to vector<1x128xf32>
    %9 = arith.addf %6, %8 : vector<1x128xf32>
    %c0_10 = arith.constant 0 : index
    %c0_11 = arith.constant 0 : index
    %c0_12 = arith.constant 0 : index
    %10 = vector.load %arg6[%c0_10, %c0_11, %c0_12] : memref<1x1x128xf32, #tpu.memory_space<vmem>>, vector<1x1x128xf32>
    %11 = vector.shape_cast %10 : vector<1x1x128xf32> to vector<1x128xf32>
    %12 = arith.addf %9, %11 : vector<1x128xf32>
    %c0_13 = arith.constant 0 : index
    %c0_14 = arith.constant 0 : index
    %c0_15 = arith.constant 0 : index
    %13 = vector.load %arg7[%c0_13, %c0_14, %c0_15] : memref<1x1x128xf32, #tpu.memory_space<vmem>>, vector<1x1x128xf32>
    %14 = vector.shape_cast %13 : vector<1x1x128xf32> to vector<1x128xf32>
    %15 = arith.addf %12, %14 : vector<1x128xf32>
    %16 = arith.index_cast %arg1 : i32 to index
    %c0_16 = arith.constant 0 : index
    %17 = vector.load %arg9[%16, %c0_16] : memref<8x128xf32, #tpu.memory_space<vmem>>, vector<1x128xf32>
    tpu.vector_store %arg9[%16, %c0_16], %15 {strides = array<i32>} : memref<8x128xf32, #tpu.memory_space<vmem>>, vector<1x128xf32>,
    return
  }
  func.func @transform_0(%arg0: i32, %arg1: i32, %arg2: memref<40xi32, #tpu.memory_space<smem>>) -> (i32, i32, i32) {
    %c8_i32 = arith.constant 8 : i32
    %0 = arith.muli %arg0, %c8_i32 : i32
    %1 = arith.addi %0, %arg1 : i32
    %c5_i32 = arith.constant 5 : i32
    %2 = arith.muli %1, %c5_i32 : i32
    %c0_i32 = arith.constant 0 : i32
    %3 = arith.addi %2, %c0_i32 : i32
    %4 = arith.index_cast %3 : i32 to index
    %5 = memref.load %arg2[%4] : memref<40xi32, #tpu.memory_space<smem>>
    %c0_i32_0 = arith.constant 0 : i32
    %c0_i32_1 = arith.constant 0 : i32
    %c0_i32_2 = arith.constant 0 : i32
    return %5, %c0_i32_0, %c0_i32_1 : i32, i32, i32
  }
  func.func @transform_1(%arg0: i32, %arg1: i32, %arg2: memref<40xi32, #tpu.memory_space<smem>>) -> (i32, i32, i32) {
    %c8_i32 = arith.constant 8 : i32
    %0 = arith.muli %arg0, %c8_i32 : i32
    %1 = arith.addi %0, %arg1 : i32
    %c5_i32 = arith.constant 5 : i32
    %2 = arith.muli %1, %c5_i32 : i32
    %c1_i32 = arith.constant 1 : i32
    %3 = arith.addi %2, %c1_i32 : i32
    %4 = arith.index_cast %3 : i32 to index
    %5 = memref.load %arg2[%4] : memref<40xi32, #tpu.memory_space<smem>>
    %c0_i32 = arith.constant 0 : i32
    %c0_i32_0 = arith.constant 0 : i32
    %c0_i32_1 = arith.constant 0 : i32
    return %5, %c0_i32, %c0_i32_0 : i32, i32, i32
  }
  func.func @transform_2(%arg0: i32, %arg1: i32, %arg2: memref<40xi32, #tpu.memory_space<smem>>) -> (i32, i32, i32) {
    %c8_i32 = arith.constant 8 : i32
    %0 = arith.muli %arg0, %c8_i32 : i32
    %1 = arith.addi %0, %arg1 : i32
    %c5_i32 = arith.constant 5 : i32
    %2 = arith.muli %1, %c5_i32 : i32
    %c2_i32 = arith.constant 2 : i32
    %3 = arith.addi %2, %c2_i32 : i32
    %4 = arith.index_cast %3 : i32 to index
    %5 = memref.load %arg2[%4] : memref<40xi32, #tpu.memory_space<smem>>
    %c0_i32 = arith.constant 0 : i32
    %c0_i32_0 = arith.constant 0 : i32
    %c0_i32_1 = arith.constant 0 : i32
    return %5, %c0_i32, %c0_i32_0 : i32, i32, i32
  }
  func.func @transform_3(%arg0: i32, %arg1: i32, %arg2: memref<40xi32, #tpu.memory_space<smem>>) -> (i32, i32, i32) {
    %c8_i32 = arith.constant 8 : i32
    %0 = arith.muli %arg0, %c8_i32 : i32
    %1 = arith.addi %0, %arg1 : i32
    %c5_i32 = arith.constant 5 : i32
    %2 = arith.muli %1, %c5_i32 : i32
    %c3_i32 = arith.constant 3 : i32
    %3 = arith.addi %2, %c3_i32 : i32
    %4 = arith.index_cast %3 : i32 to index
    %5 = memref.load %arg2[%4] : memref<40xi32, #tpu.memory_space<smem>>
    %c0_i32 = arith.constant 0 : i32
    %c0_i32_0 = arith.constant 0 : i32
    %c0_i32_1 = arith.constant 0 : i32
    return %5, %c0_i32, %c0_i32_0 : i32, i32, i32
  }
  func.func @transform_4(%arg0: i32, %arg1: i32, %arg2: memref<40xi32, #tpu.memory_space<smem>>) -> (i32, i32, i32) {
    %c8_i32 = arith.constant 8 : i32
    %0 = arith.muli %arg0, %c8_i32 : i32
    %1 = arith.addi %0, %arg1 : i32
    %c5_i32 = arith.constant 5 : i32
    %2 = arith.muli %1, %c5_i32 : i32
    %c4_i32 = arith.constant 4 : i32
    %3 = arith.addi %2, %c4_i32 : i32
    %4 = arith.index_cast %3 : i32 to index
    %5 = memref.load %arg2[%4] : memref<40xi32, #tpu.memory_space<smem>>
    %c0_i32 = arith.constant 0 : i32
    %c0_i32_0 = arith.constant 0 : i32
    %c0_i32_1 = arith.constant 0 : i32
    return %5, %c0_i32, %c0_i32_0 : i32, i32, i32
  }
  func.func @transform_5(%arg0: i32, %arg1: i32, %arg2: memref<40xi32, #tpu.memory_space<smem>>) -> (i32, i32) {
    %c0_i32 = arith.constant 0 : i32
    %c0_i32_0 = arith.constant 0 : i32
    %c0_i32_1 = arith.constant 0 : i32
    return %c0_i32, %c0_i32_0 : i32, i32
  }
  func.func @transform_6(%arg0: i32, %arg1: i32, %arg2: memref<40xi32, #tpu.memory_space<smem>>) -> (i32, i32) {
    %c0_i32 = arith.constant 0 : i32
    %c0_i32_0 = arith.constant 0 : i32
    return %arg0, %c0_i32 : i32, i32
  }
}

</mosaic_0001>

<bundles_post_ra>
// kernel: tpu_custom_call.1
= control target key start
LH: loop header
LB: loop body
LE: loop exit
PB: predicated region body
PF: predicated region fallthrough
CT: control target
= control target key end

     0   :  { %s1895_s0 = inlined_call_operand.hbm [shape: s32[40], index: 0, kind: input, shape index: {}]   ;;  %s1896_s1 = inlined_call_operand.hbm [shape: f32[64,1,128], index: 1, kind: input, shape index: {}]   ;;  %s1897_s2 = inlined_call_operand.hbm [shape: f32[64,1,128], index: 2, kind: input, shape index: {}]   ;;  %s1898_s3 = inlined_call_operand.hbm [shape: f32[64,1,128], index: 3, kind: input, shape index: {}]   ;;  %s1899_s4 = inlined_call_operand.hbm [shape: f32[64,1,128], index: 4, kind: input, shape index: {}]   ;;  %s1900_s5 = inlined_call_operand.hbm [shape: f32[64,1,128], index: 5, kind: input, shape index: {}]   ;;  %s1901_s6 = inlined_call_operand.vmem [shape: f32[1,128], index: 6, kind: input, shape index: {}]   ;;  %s1902_s7 = inlined_call_operand.hbm [shape: f32[8,128], index: 7, kind: output, shape index: {}]  }
   0x1   :  { %1924 = sst [smem:[#allocation44_spill]] %s1896_s1  ;;  %s867_s26 = scalar_lea.hbm %s1895_s0, 16 }
   0x2   :  { %1925 = sst [smem:[#allocation45_spill]] %s1897_s2  ;;  %p868_p0 = scmp.ne.s32.totalorder %s1895_s0, %s867_s26 }
   0x3   :  { %1926 = sst [smem:[#allocation46_spill]] %s1898_s3  ;;  %p871_p1 = scmp.lt.u32.totalorder %s867_s26, %s1895_s0 }
   0x4   :  { %1927 = sst [smem:[#allocation47_spill]] %s1899_s4 }
   0x5   :  { %1928 = sst [smem:[#allocation48_spill]] %s1900_s5  ;;  %p873_p2 = pnand %p871_p1, %p868_p0 }
   0x6   :  { %1929 = sst [smem:[#allocation49_spill]] %s1901_s6 }
   0x7   :  { %1930 = sst [smem:[#allocation50_spill]] %s1902_s7 }
   0x8   :  { %876 = shalt.err (!%p873_p2)  }
   0x9   :  { %s1223_s8 = smov [#allocation3]  }
   0xa   :  { %13 = dma.hbm_to_smem %s1895_s0, 16, %s1223_s8, [#allocation2] }
   0xb   :  { %1125 = dma.done.wait [#allocation2], 16 }
   0xc   :  { %1126 = vsyncadd [#allocation2], 4294967280 }
   0xd   :  { %15 = sfence }
   0xe   :  { %16 = vsyncpa [#allocation5], 0 }
   0xf   :  { %18 = vsyncpa [#allocation5 + $0x1], 0 }
  0x10   :  { %19 = vsyncpa [#allocation8], 0 }
  0x11   :  { %21 = vsyncpa [#allocation8 + $0x1], 0 }
  0x12   :  { %22 = vsyncpa [#allocation11], 0 }
  0x13   :  { %24 = vsyncpa [#allocation11 + $0x1], 0 }
  0x14   :  { %25 = vsyncpa [#allocation6], 0  ;;  %s1282_s11 = smov 0   ;;  %s1284_s12 = smov 0  }
  0x15   :  { %s1286_s13 = smov 0   ;;  %s1288_s14 = smov 0  }
  0x16   :  { %s1290_s15 = smov 0   ;;  %s1292_s0 = smov 0  }
  0x17   :  { %s1294_s16 = smov 0   ;;  %s1296_s17 = smov 0  }
  0x18   :  { %s1298_s18 = smov 0   ;;  %s1300_s19 = smov 0  }
  0x19   :  { %s1302_s20 = smov 0   ;;  %s1304_s21 = smov 0  }
  0x1a   :  { %s1306_s22 = smov 0   ;;  %s1308_s23 = smov 0  }
  0x1b   :  { %s1310_s24 = smov 0   ;;  %s1312_s25 = smov 0  }
  0x1c   :  { %s1314_s26 = smov 0   ;;  %s1316_s27 = smov 0  }
  0x1d LB: > { %1931 = sst [smem:[#allocation31_spill]] %s1153_s11  ;;  %s1371_s28 = sadd.s32 4294967295, %s1221_s27   ;;  %s1221_s27 = sphi %s1316_s27, %s31_s27   ;;  %s1217_s26 = sphi %s1314_s26, %s2027_s26   ;;  %s1213_s25 = sphi %s1312_s25, %s2012_s25   ;;  %s1209_s24 = sphi %s1310_s24, %s2011_s24   ;;  %s1205_s23 = sphi %s1308_s23, %s2026_s23   ;;  %s1201_s22 = sphi %s1306_s22, %s2025_s22   ;;  %s1197_s21 = sphi %s1304_s21, %s2024_s21   ;;  %s1193_s20 = sphi %s1302_s20, %s2008_s20   ;;  %s1189_s19 = sphi %s1300_s19, %s2023_s19   ;;  %s1185_s18 = sphi %s1298_s18, %s2022_s18   ;;  %s1181_s17 = sphi %s1296_s17, %s2021_s17   ;;  %s1177_s16 = sphi %s1294_s16, %s2020_s16   ;;  %s1173_s0 = sphi %s1292_s0, %s2019_s0   ;;  %s1169_s15 = sphi %s1290_s15, %s2018_s15   ;;  %s1165_s14 = sphi %s1288_s14, %s2017_s14   ;;  %s1161_s13 = sphi %s1286_s13, %s2016_s13   ;;  %s1157_s12 = sphi %s1284_s12, %s2015_s12   ;;  %s1153_s11 = sphi %s1282_s11, %s2013_s11  }
  0x1e   : > { %1932 = sst [smem:[#allocation32_spill]] %s1161_s13  ;;  %s40_s29 = sadd.s32 1, %s1217_s26 }
  0x1f   : > { %1933 = sst [smem:[#allocation33_spill]] %s1193_s20  ;;  %p41_p3 = scmp.ge.s32.totalorder %s40_s29, 8 }
  0x20   : > { %1934 = sst [smem:[#allocation34_spill]] %s1197_s21  ;;  %s1375_s30 = smul.u32 5, %s1217_s26 }
  0x21   : > { %1935 = sst [smem:[#allocation35_spill]] %s1209_s24  ;;  %p1917_p4 = scmp.eq.s32.totalorder %s1221_s27, 0 }
  0x22   : > { %1936 = sst [smem:[#allocation36_spill]] %s1213_s25  ;;  %p1916_p5 = scmp.eq.s32.totalorder %s1371_s28, 0 }
  0x23   : > { %1937 = sst [smem:[#allocation37_spill]] %s1217_s26  ;;  %s2029_s29 = smov (%p41_p3, %s40_s29), 0 }
  0x24   : > { %1938 = sst [smem:[#allocation38_spill]] %s2029_s29  ;;  %s84_s8 = sadd.s32 1, %s1375_s30 }
  0x25   : > { %s94_s9 = sadd.s32 1, %s1197_s21  ;;  %s1384_s10 = smul.u32 5, %s2029_s29 }
  0x26   : > { %s85_s7 = sld [smem:[#allocation3 + %s84_s8]]  ;;  %p101_p6 = scmp.ne.s32.totalorder %s1197_s21, %s1193_s20 }
  0x27   : > { %p107_p7 = scmp.ne.s32.totalorder %s1193_s20, %s1189_s19  ;;  %s89_s25 = sadd.s32 1, %s1384_s10 }
  0x28   : > { %s90_s26 = sld [smem:[#allocation3 + %s89_s25]]  ;;  %p1392_p8 = por %p101_p6, %p1917_p4 }
  0x29   : > { %p1398_p9 = por %p107_p7, %p1916_p5  ;;  %p1915_p10 = scmp.lt.s32.totalorder %s1221_s27, 8 }
  0x2a   : > { %s312_s20 = sand.u32 1, %s1197_s21   ;;  %s2031_s8 = smov (!%p1392_p8, %s84_s8), 0 }
  0x2b   : > { %s1940_s29 = scalar_select %p1398_p9, 1, 0 }
  0x2c   : > { %s671_s25 = scalar_select %p1392_p8, [#allocation3], [#allocation15] }
  0x2d   : > { %1941 = sst [smem:[#allocation39_spill]] %s1940_s29  ;;  %s313_s11 = scalar_lea.vmem [#allocation7], %s312_s20 }
  0x2e   : > { %s91_s5 = ssub.s32 %s85_s7, %s90_s26  ;;  %s325_s3 = sshll.u32 %s313_s11, 4  ;;  %s1409_s3 = int_to_ptr.vmem [resolvable:$true] %s325_s3 }
  0x2f   : > { %p92_p11 = scmp.eq.s32.totalorder %s91_s5, 0  ;;  %s2033_s25 = smov (!%p1915_p10, %s671_s25), [#allocation20] }
  0x30   : > { %s2035_s8 = smov (!%p1915_p10, %s2031_s8), 0  ;;  %p1422_p12 = pnand %p1915_p10, %p1392_p8 }
  0x31   : > { %s1414_s29 = scalar_select %p92_p11, %s1197_s21, %s94_s9  }
  0x32   : > { %p663_p13 = scmp.ge.s32.totalorder %s1221_s27, 1  ;;  %s318_s7 = sld [smem:[%s2033_s25 + %s2035_s8]] }
  0x33   : > { %1942 = sst [smem:[#allocation40_spill]] %s1414_s29  ;;  %p396_p0 = scmp.lt.s32.totalorder %s1221_s27, 9 }
  0x34   : > { %s1914_s11 = sadd.s32 3, %s1375_s30  ;;  %s161_s20 = sadd.s32 3, %s1384_s10 }
  0x35   : > { %p1428_p1 = pnand %p663_p13, %p396_p0  ;;  %s1436_s9 = sld [smem:[#allocation3 + %s1914_s11]] }
  0x36   : > { %s1946_s2 = sld [smem:[#allocation45_spill]]  ;;  %s1947_s25 = sand.u32 1, %s1221_s27  }
  0x37   : > { %s1944_s5 = scalar_select %p1428_p1, 1, 0 }
  0x38   : > { %s659_s26 = sshll.u32 %s318_s7, 4  ;;  %s1443_s8 = sld [smem:[#allocation3 + %s161_s20]] }
  0x39   : > { %1945 = sst [smem:[#allocation41_spill]] %s1944_s5  ;;  %s1447_s13 = scalar_lea.sflag [#allocation8], %s1947_s25 }
  0x3a   : > { %p879_p3 = pneg %p1422_p12 }
  0x3c   : > { %s1441_s21 = scalar_lea.hbm %s1946_s2, %s659_s26  ;;  %s882_s26 = scalar_lea.hbm %s1946_s2, 1024 }
  0x3d   : > { %s877_s5 = scalar_lea.hbm %s1441_s21, 16  ;;  %p883_p8 = scmp.lt.u32.totalorder %s1441_s21, %s1946_s2 }
  0x3e   : > { %p878_p2 = scmp.ne.s32.totalorder %s1441_s21, %s877_s5  ;;  %p884_p11 = scmp.lt.u32.totalorder %s882_s26, %s877_s5 }
  0x3f   : > { %p886_p0 = scmp.lt.u32.totalorder %s877_s5, %s1441_s21 }
  0x40   : > { %p880_p6 = pnand %p879_p3, %p878_p2  ;;  %p885_p13 = por %p884_p11, %p883_p8 }
  0x42   : > { %p881_p7 = pneg %p880_p6  ;;  %p887_p10 = por %p886_p0, %p885_p13 }
  0x44   : > { %p888_p5 = pnand %p887_p10, %p881_p7 }
  0x46   : > { %891 = shalt.err (!%p888_p5)
}
  0x47   : > { %s892_s20 = scalar_lea.vmem %s1409_s3, 16  ;;  %s1224_s25 = smov [#allocation7]  }
  0x48   : > { %p893_p2 = scmp.ne.s32.totalorder %s1409_s3, %s892_s20  ;;  %s897_s29 = sshll.u32 %s1224_s25, 4  ;;  %s898_s29 = int_to_ptr.vmem [resolvable:$false] %s897_s29 }
  0x49   : > { %s899_s11 = scalar_lea.vmem %s898_s29, 32  ;;  %p900_p9 = scmp.lt.s32.totalorder %s1409_s3, %s898_s29 }
  0x4a   : > { %p895_p6 = pnand %p893_p2, %p879_p3  ;;  %p901_p8 = scmp.lt.s32.totalorder %s899_s11, %s892_s20 }
  0x4c   : > { %p896_p4 = pneg %p895_p6  ;;  %p902_p11 = por %p901_p8, %p900_p9 }
  0x4e   : > { %p903_p13 = pnand %p902_p11, %p896_p4 }
  0x50   : > { %906 = shalt.err (!%p903_p13)
}
  0x51   : > { %702 = dma.hbm_to_vmem [thread:$0]  (!%p1422_p12), %s1441_s21, 16, %s1409_s3, %s1447_s13  }
  0x52   : > { %p173_p4 = scmp.ne.s32.totalorder %s1173_s0, %s1169_s15  ;;  %s166_s19 = sadd.s32 1, %s1173_s0 }
  0x53   : > { %p179_p5 = scmp.ne.s32.totalorder %s1169_s15, %s1165_s14  ;;  %p1948_p9 = scmp.eq.s32.totalorder %s1221_s27, 0 }
  0x54   : > { %s356_s5 = sand.u32 1, %s1173_s0   ;;  %p1949_p3 = scmp.eq.s32.totalorder %s1371_s28, 0 }
  0x55   : > { %p175_p10 = por %p173_p4, %p1948_p9  ;;  %s163_s26 = ssub.s32 %s1436_s9, %s1443_s8 }
  0x56   : > { %p1485_p7 = por %p179_p5, %p1949_p3  ;;  %p164_p0 = scmp.eq.s32.totalorder %s163_s26, 0 }
  0x57   : > { %s357_s3 = scalar_lea.vmem [#allocation10], %s356_s5  ;;  %s1951_s20 = sadd.s32 3, %s1375_s30 }
  0x58   : > { %s1950_s7 = scalar_select %p1485_p7, 1, 0 }
  0x59   : > { %s369_s21 = sshll.u32 %s357_s3, 4  ;;  %s2037_s20 = smov (!%p175_p10, %s1951_s20), 0  ;;  %s1509_s21 = int_to_ptr.vmem [resolvable:$true] %s369_s21 }
  0x5a   : > { %s677_s6 = scalar_select %p175_p10, [#allocation3], [#allocation17] }
  0x5b   : > { %s1492_s14 = scalar_select %p164_p0, %s1173_s0, %s166_s19  }
  0x5c   : > { %p1952_p12 = scmp.lt.s32.totalorder %s1221_s27, 8  ;;  %s1507_s8 = sld [smem:[#allocation3 + %s1375_s30]] }
  0x5d   : > { %s1512_s29 = sld [smem:[#allocation3 + %s1384_s10]]  ;;  %s1957_s3 = sand.u32 1, %s1221_s27  }
  0x5e   : > { %s2039_s6 = smov (!%p1952_p12, %s677_s6), [#allocation22]  ;;  %p1953_p2 = pmov %p1952_p12 }
  0x5f   : > { %s1956_s4 = sld [smem:[#allocation47_spill]] }
  0x60   : > { %s2041_s20 = smov (!%p1953_p2, %s2037_s20), 0  ;;  %p1954_p6 = pmov %p1953_p2 }
  0x61   : > { %s362_s9 = sld [smem:[%s2039_s6 + %s2041_s20]]  ;;  %s1525_s6 = scalar_lea.sflag [#allocation11], %s1957_s3 }
  0x62   : > { %p1502_p8 = pnand %p1954_p6, %p175_p10 }
  0x64   : > { %p909_p5 = pneg %p1502_p8 }
  0x67   : > { %s661_s11 = sshll.u32 %s362_s9, 4 }
  0x68   : > { %s1519_s26 = scalar_lea.hbm %s1956_s4, %s661_s11  ;;  %s912_s11 = scalar_lea.hbm %s1956_s4, 1024 }
  0x69   : > { %s907_s20 = scalar_lea.hbm %s1519_s26, 16  ;;  %p913_p3 = scmp.lt.u32.totalorder %s1519_s26, %s1956_s4 }
  0x6a   : > { %p908_p4 = scmp.ne.s32.totalorder %s1519_s26, %s907_s20  ;;  %p914_p0 = scmp.lt.u32.totalorder %s912_s11, %s907_s20 }
  0x6b   : > { %p916_p2 = scmp.lt.u32.totalorder %s907_s20, %s1519_s26 }
  0x6c   : > { %p910_p9 = pnand %p909_p5, %p908_p4  ;;  %p915_p12 = por %p914_p0, %p913_p3 }
  0x6e   : > { %p911_p10 = pneg %p910_p9  ;;  %p917_p6 = por %p916_p2, %p915_p12 }
  0x70   : > { %p918_p13 = pnand %p917_p6, %p911_p10 }
  0x72   : > { %921 = shalt.err (!%p918_p13)
}
  0x73   : > { %s922_s3 = scalar_lea.vmem %s1509_s21, 16  ;;  %s1225_s9 = smov [#allocation10]  }
  0x74   : > { %p923_p4 = scmp.ne.s32.totalorder %s1509_s21, %s922_s3  ;;  %s927_s19 = sshll.u32 %s1225_s9, 4  ;;  %s928_s19 = int_to_ptr.vmem [resolvable:$false] %s927_s19 }
  0x75   : > { %s929_s2 = scalar_lea.vmem %s928_s19, 32  ;;  %p930_p7 = scmp.lt.s32.totalorder %s1509_s21, %s928_s19 }
  0x76   : > { %p925_p9 = pnand %p923_p4, %p909_p5  ;;  %p931_p3 = scmp.lt.s32.totalorder %s929_s2, %s922_s3 }
  0x78   : > { %p926_p11 = pneg %p925_p9  ;;  %p932_p0 = por %p931_p3, %p930_p7 }
  0x7a   : > { %p933_p12 = pnand %p932_p0, %p926_p11 }
  0x7c   : > { %936 = shalt.err (!%p933_p12)
}
  0x7d   : > { %712 = dma.hbm_to_vmem [thread:$0]  (!%p1502_p8), %s1519_s26, 16, %s1509_s21, %s1525_s6  }
  0x7e   : > { %p1958_p7 = scmp.ne.s32.totalorder %s1209_s24, %s1205_s23  ;;  %p1959_p11 = scmp.eq.s32.totalorder %s1221_s27, 0 }
  0x7f   : > { %p1961_p5 = scmp.ne.s32.totalorder %s1205_s23, %s1201_s22  ;;  %p1962_p10 = scmp.eq.s32.totalorder %s1371_s28, 0 }
  0x80   : > { %p1558_p13 = por %p1959_p11, %p1958_p7  ;;  %s58_s11 = sadd.s32 1, %s1209_s24 }
  0x81   : > { %p1567_p2 = por %p1962_p10, %p1961_p5  ;;  %s289_s21 = sand.u32 1, %s1209_s24  }
  0x82   : > { %s55_s26 = ssub.s32 %s1507_s8, %s1512_s29  ;;  %p1965_p6 = scmp.lt.s32.totalorder %s1221_s27, 8 }
  0x83   : > { %s1963_s20 = scalar_select %p1567_p2, 1, 0 }
  0x84   : > { %p56_p8 = scmp.eq.s32.totalorder %s55_s26, 0  ;;  %p1966_p4 = pmov %p1965_p6 }
  0x85   : > { %s668_s5 = scalar_select %p1558_p13, [#allocation3], [#allocation14] }
  0x86   : > { %s1578_s22 = scalar_select %p56_p8, %s1209_s24, %s58_s11  }
  0x87   : > { %s669_s3 = scalar_select %p1558_p13, %s1375_s30, 0 }
  0x88   : > { %1964 = sst [smem:[#allocation42_spill]] %s1578_s22  ;;  %s2043_s5 = smov (!%p1965_p6, %s668_s5), [#allocation19] }
  0x89   : > { %s2045_s3 = smov (!%p1966_p4, %s669_s3), 0  ;;  %s292_s9 = scalar_lea.vmem [#allocation4], %s289_s21 }
  0x8a   : > { %s303_s19 = sshll.u32 %s292_s9, 4  ;;  %p1967_p9 = pmov %p1966_p4  ;;  %s1595_s19 = int_to_ptr.vmem [resolvable:$true] %s303_s19 }
  0x8b   : > { %s296_s8 = sld [smem:[%s2043_s5 + %s2045_s3]]  ;;  %s120_s29 = sadd.s32 2, %s1375_s30 }
  0x8c   : > { %p1591_p3 = pnand %p1967_p9, %p1558_p13  ;;  %s125_s11 = sadd.s32 2, %s1384_s10 }
  0x8d   : > { %s1601_s26 = sld [smem:[#allocation3 + %s120_s29]]  ;;  %s290_s5 = scalar_lea.sflag [#allocation5], %s289_s21 }
  0x8e   : > { %s1603_s4 = sld [smem:[#allocation3 + %s125_s11]]  ;;  %p939_p7 = pneg %p1591_p3 }
  0x8f   : > { %s1969_s1 = sld [smem:[#allocation44_spill]] }
  0x91   : > { %s658_s22 = sshll.u32 %s296_s8, 4 }
  0x95   : > { %s1608_s24 = scalar_lea.hbm %s1969_s1, %s658_s22  ;;  %s942_s9 = scalar_lea.hbm %s1969_s1, 1024 }
  0x96   : > { %s937_s3 = scalar_lea.hbm %s1608_s24, 16  ;;  %p943_p5 = scmp.lt.u32.totalorder %s1608_s24, %s1969_s1 }
  0x97   : > { %p938_p12 = scmp.ne.s32.totalorder %s1608_s24, %s937_s3  ;;  %p944_p10 = scmp.lt.u32.totalorder %s942_s9, %s937_s3 }
  0x98   : > { %p946_p6 = scmp.lt.u32.totalorder %s937_s3, %s1608_s24 }
  0x99   : > { %p940_p11 = pnand %p939_p7, %p938_p12  ;;  %p945_p8 = por %p944_p10, %p943_p5 }
  0x9b   : > { %p941_p13 = pneg %p940_p11  ;;  %p947_p4 = por %p946_p6, %p945_p8 }
  0x9d   : > { %p948_p9 = pnand %p947_p4, %p941_p13 }
  0x9f   : > { %951 = shalt.err (!%p948_p9)
}
  0xa0   : > { %s952_s21 = scalar_lea.vmem %s1595_s19, 16  ;;  %s1226_s8 = smov [#allocation4]  }
  0xa1   : > { %p953_p12 = scmp.ne.s32.totalorder %s1595_s19, %s952_s21  ;;  %s957_s11 = sshll.u32 %s1226_s8, 4  ;;  %s958_s11 = int_to_ptr.vmem [resolvable:$false] %s957_s11 }
  0xa2   : > { %s959_s22 = scalar_lea.vmem %s958_s11, 32  ;;  %p960_p2 = scmp.lt.s32.totalorder %s1595_s19, %s958_s11 }
  0xa3   : > { %p955_p11 = pnand %p953_p12, %p939_p7  ;;  %p961_p5 = scmp.lt.s32.totalorder %s959_s22, %s952_s21 }
  0xa5   : > { %p956_p0 = pneg %p955_p11  ;;  %p962_p10 = por %p961_p5, %p960_p2 }
  0xa7   : > { %p963_p8 = pnand %p962_p10, %p956_p0 }
  0xa9   : > { %966 = shalt.err (!%p963_p8)
}
  0xaa   : > { %697 = dma.hbm_to_vmem [thread:$0]  (!%p1591_p3), %s1608_s24, 16, %s1595_s19, %s290_s5  }
  0xab   : > { %p1970_p2 = scmp.eq.s32.totalorder %s1221_s27, 0  ;;  %p1971_p0 = scmp.ne.s32.totalorder %s1185_s18, %s1181_s17 }
  0xac   : > { %p143_p13 = scmp.ne.s32.totalorder %s1181_s17, %s1177_s16  ;;  %s130_s3 = sadd.s32 1, %s1185_s18 }
  0xad   : > { %p1642_p7 = por %p1971_p0, %p1970_p2  ;;  %s334_s9 = sand.u32 1, %s1185_s18  }
  0xae   : > { %s127_s25 = ssub.s32 %s1601_s26, %s1603_s4  ;;  %p1973_p6 = scmp.eq.s32.totalorder %s1371_s28, 0 }
  0xaf   : > { %p128_p3 = scmp.eq.s32.totalorder %s127_s25, 0  ;;  %s1975_s19 = sld [smem:[#allocation32_spill]] }
  0xb0   : > { %p1654_p4 = por %p143_p13, %p1973_p6  ;;  %s2047_s29 = smov (!%p1642_p7, %s120_s29), 0 }
  0xb1   : > { %s674_s24 = scalar_select %p1642_p7, [#allocation3], [#allocation16] }
  0xb2   : > { %s1974_s21 = scalar_select %p1654_p4, 1, 0 }
  0xb3   : > { %s1661_s5 = scalar_select %p128_p3, %s1185_s18, %s130_s3  }
  0xb4   : > { %p1977_p9 = scmp.lt.s32.totalorder %s1221_s27, 8  ;;  %s335_s4 = scalar_lea.vmem [#allocation9], %s334_s9 }
  0xb5   : > { %1976 = sst [smem:[#allocation43_spill]] %s1661_s5  ;;  %s347_s16 = sshll.u32 %s335_s4, 4  ;;  %s1679_s16 = int_to_ptr.vmem [resolvable:$true] %s347_s16 }
  0xb6   : > { %s2049_s24 = smov (!%p1977_p9, %s674_s24), [#allocation21]  ;;  %p1978_p12 = pmov %p1977_p9 }
  0xb7   : > { %p1979_p11 = pmov %p1977_p9  ;;  %s192_s11 = sadd.s32 4, %s1375_s30 }
  0xb8   : > { %s2051_s29 = smov (!%p1978_p12, %s2047_s29), 0  ;;  %s197_s22 = sadd.s32 4, %s1384_s10 }
  0xb9   : > { %p1675_p5 = pnand %p1979_p11, %p1642_p7  ;;  %s340_s8 = sld [smem:[%s2049_s24 + %s2051_s29]] }
  0xba   : > { %s1685_s3 = sld [smem:[#allocation3 + %s192_s11]] }
  0xbb   : > { %s1687_s25 = sld [smem:[#allocation3 + %s197_s22]]  ;;  %p969_p2 = pneg %p1675_p5 }
  0xbc   : > { %s1981_s1 = sld [smem:[#allocation46_spill]] }
  0xbf   : > { %s660_s9 = sshll.u32 %s340_s8, 4 }
  0xc2   : > { %s1692_s5 = scalar_lea.hbm %s1981_s1, %s660_s9  ;;  %s972_s8 = scalar_lea.hbm %s1981_s1, 1024 }
  0xc3   : > { %s967_s29 = scalar_lea.hbm %s1692_s5, 16  ;;  %p973_p13 = scmp.lt.u32.totalorder %s1692_s5, %s1981_s1 }
  0xc4   : > { %p968_p8 = scmp.ne.s32.totalorder %s1692_s5, %s967_s29  ;;  %p974_p6 = scmp.lt.u32.totalorder %s972_s8, %s967_s29 }
  0xc5   : > { %p976_p9 = scmp.lt.u32.totalorder %s967_s29, %s1692_s5 }
  0xc6   : > { %p970_p0 = pnand %p969_p2, %p968_p8  ;;  %p975_p3 = por %p974_p6, %p973_p13 }
  0xc8   : > { %p971_p7 = pneg %p970_p0  ;;  %p977_p12 = por %p976_p9, %p975_p3 }
  0xca   : > { %p978_p11 = pnand %p977_p12, %p971_p7 }
  0xcc   : > { %981 = shalt.err (!%p978_p11)
}
  0xcd   : > { %s982_s4 = scalar_lea.vmem %s1679_s16, 16  ;;  %s1227_s2 = smov [#allocation9]  }
  0xce   : > { %p983_p8 = scmp.ne.s32.totalorder %s1679_s16, %s982_s4  ;;  %s987_s10 = sshll.u32 %s1227_s2, 4  ;;  %s988_s10 = int_to_ptr.vmem [resolvable:$false] %s987_s10 }
  0xcf   : > { %s989_s24 = scalar_lea.vmem %s988_s10, 32  ;;  %p990_p4 = scmp.lt.s32.totalorder %s1679_s16, %s988_s10 }
  0xd0   : > { %p985_p0 = pnand %p983_p8, %p969_p2  ;;  %p991_p13 = scmp.lt.s32.totalorder %s989_s24, %s982_s4 }
  0xd2   : > { %p986_p10 = pneg %p985_p0  ;;  %p992_p6 = por %p991_p13, %p990_p4 }
  0xd4   : > { %p993_p3 = pnand %p992_p6, %p986_p10 }
  0xd6   : > { %996 = shalt.err (!%p993_p3)
}
  0xd7   : > { %s1982_s29 = sld [smem:[#allocation31_spill]]  ;;  %p1983_p4 = scmp.eq.s32.totalorder %s1221_s27, 0 }
  0xd8   : > { %707 = dma.hbm_to_vmem [thread:$0]  (!%p1675_p5), %s1692_s5, 16, %s1679_s16, %s1447_s13  }
  0xd9   : > { %p1984_p10 = scmp.ne.s32.totalorder %s1975_s19, %s1157_s12  ;;  %s202_s26 = sadd.s32 1, %s1975_s19 }
  0xda   : > { %s199_s8 = ssub.s32 %s1685_s3, %s1687_s25  ;;  %p1985_p9 = scmp.eq.s32.totalorder %s1371_s28, 0 }
  0xdb   : > { %p211_p2 = por %p1984_p10, %p1983_p4  ;;  %p200_p11 = scmp.eq.s32.totalorder %s199_s8, 0 }
  0xdc   : > { %s378_s9 = sand.u32 1, %s1975_s19   ;;  %p1987_p8 = scmp.lt.s32.totalorder %s1221_s27, 8 }
  0xdd   : > { %p215_p7 = scmp.ne.s32.totalorder %s1157_s12, %s1982_s29  ;;  %s2053_s19 = smov (!%p200_p11, %s1975_s19), %s202_s26 }
  0xde   : > { %s680_s4 = scalar_select %p211_p2, [#allocation3], [#allocation18] }
  0xdf   : > { %p1734_p12 = por %p215_p7, %p1985_p9  ;;  %s2055_s11 = smov (!%p211_p2, %s192_s11), 0 }
  0xe0   : > { %s2057_s4 = smov (!%p1987_p8, %s680_s4), [#allocation23]  ;;  %p1988_p5 = pmov %p1987_p8 }
  0xe1   : > { %s1986_s22 = scalar_select %p1734_p12, 1, 0 }
  0xe2   : > { %s2059_s11 = smov (!%p1988_p5, %s2055_s11), 0  ;;  %p1989_p0 = pmov %p1988_p5 }
  0xe3   : > { %s384_s5 = sld [smem:[%s2057_s4 + %s2059_s11]]  ;;  %s379_s16 = scalar_lea.vmem [#allocation12], %s378_s9 }
  0xe4   : > { %p1750_p13 = pnand %p1989_p0, %p211_p2  ;;  %s391_s3 = sshll.u32 %s379_s16, 4  ;;  %s1754_s3 = int_to_ptr.vmem [resolvable:$true] %s391_s3 }
  0xe5   : > { %s1991_s10 = sld [smem:[#allocation48_spill]] }
  0xe6   : > { %p999_p3 = pneg %p1750_p13 }
  0xe9   : > { %s662_s25 = sshll.u32 %s384_s5, 4 }
  0xeb   : > { %s389_s24 = scalar_lea.hbm %s1991_s10, %s662_s25  ;;  %s1002_s11 = scalar_lea.hbm %s1991_s10, 1024 }
  0xec   : > { %s997_s29 = scalar_lea.hbm %s389_s24, 16  ;;  %p1003_p2 = scmp.lt.u32.totalorder %s389_s24, %s1991_s10 }
  0xed   : > { %p998_p6 = scmp.ne.s32.totalorder %s389_s24, %s997_s29  ;;  %p1004_p7 = scmp.lt.u32.totalorder %s1002_s11, %s997_s29 }
  0xee   : > { %p1006_p11 = scmp.lt.u32.totalorder %s997_s29, %s389_s24 }
  0xef   : > { %p1000_p4 = pnand %p999_p3, %p998_p6  ;;  %p1005_p9 = por %p1004_p7, %p1003_p2 }
  0xf1   : > { %p1001_p10 = pneg %p1000_p4  ;;  %p1007_p8 = por %p1006_p11, %p1005_p9 }
  0xf3   : > { %p1008_p5 = pnand %p1007_p8, %p1001_p10 }
  0xf5   : > { %1011 = shalt.err (!%p1008_p5)
}
  0xf6   : > { %s1012_s5 = scalar_lea.vmem %s1754_s3, 16  ;;  %s1228_s16 = smov [#allocation12]  }
  0xf7   : > { %p1013_p0 = scmp.ne.s32.totalorder %s1754_s3, %s1012_s5  ;;  %s1017_s25 = sshll.u32 %s1228_s16, 4  ;;  %s1018_s25 = int_to_ptr.vmem [resolvable:$false] %s1017_s25 }
  0xf8   : > { %s1019_s2 = scalar_lea.vmem %s1018_s25, 32  ;;  %p1020_p12 = scmp.lt.s32.totalorder %s1754_s3, %s1018_s25 }
  0xf9   : > { %p1015_p6 = pnand %p1013_p0, %p999_p3  ;;  %p1021_p2 = scmp.lt.s32.totalorder %s1019_s2, %s1012_s5 }
  0xfb   : > { %p1016_p4 = pneg %p1015_p6  ;;  %p1022_p7 = por %p1021_p2, %p1020_p12 }
  0xfd   : > { %p1023_p9 = pnand %p1022_p7, %p1016_p4 }
  0xff   : > { %1026 = shalt.err (!%p1023_p9)
}
 0x100   : > { %717 = dma.hbm_to_vmem [thread:$0]  (!%p1750_p13), %s389_s24, 16, %s1754_s3, %s1525_s6  }
 0x101   : > { %400 = sbr.rel (%p1428_p1) target bundleno = 322 (0x142), region = 44  ;;  %s402_s29 = sand.u32 (!%p1428_p1), 1, %s1205_s23  }
 0x102   : > { %s403_s26 = scalar_lea.sflag (!%p1428_p1), [#allocation5], %s402_s29  ;;  %s405_s8 = scalar_lea.vmem (!%p1428_p1), [#allocation4], %s402_s29 }
 0x103   : > { %p1993_p3 = scmp.ne.s32.totalorder (!%p1428_p1), %s1963_s20, 0 }
 0x108   : > { %1128 = dma.done.wait (%p1993_p3), %s403_s26, 16  }
 0x109   : > { %1130 = vsyncadd (%p1993_p3), %s403_s26, 4294967280  ;;  %s1994_s11 = sld [smem:[#allocation33_spill]]  ;;  %s1995_s9 = sld [smem:[#allocation39_spill]] }
 0x10a   : > { %s410_s13 = sand.u32 1, %s1371_s28  }
 0x10b   : > { %s411_s5 = scalar_lea.sflag [#allocation8], %s410_s13 }
 0x10f   : > { %s412_s4 = sand.u32 1, %s1994_s11   ;;  %p1996_p12 = scmp.ne.s32.totalorder %s1995_s9, 0 }
 0x110   : > { %s413_s6 = scalar_lea.vmem [#allocation7], %s412_s4 }
 0x111   : > { %1132 = dma.done.wait (%p1996_p12), %s411_s5, 16  }
 0x112   : > { %1134 = vsyncadd (%p1996_p12), %s411_s5, 4294967280  ;;  %s420_s3 = sand.u32 1, %s1181_s17   ;;  %p1997_p1 = scmp.ne.s32.totalorder %s1974_s21, 0 }
 0x113   : > { %s421_s24 = scalar_lea.vmem [#allocation9], %s420_s3 }
 0x114   : > { %1136 = dma.done.wait (%p1997_p1), %s411_s5, 16  }
 0x115   : > { %1138 = vsyncadd (%p1997_p1), %s411_s5, 4294967280  ;;  %s428_s20 = sand.u32 1, %s1169_s15   ;;  %s427_s16 = scalar_lea.sflag [#allocation11], %s410_s13 }
 0x116   : > { %s429_s25 = scalar_lea.vmem [#allocation10], %s428_s20  ;;  %p1998_p13 = scmp.ne.s32.totalorder %s1950_s7, 0 }
 0x118   : > { %1140 = dma.done.wait (%p1998_p13), %s427_s16, 16  }
 0x119   : > { %1142 = vsyncadd (%p1998_p13), %s427_s16, 4294967280  ;;  %s436_s2 = sand.u32 1, %s1157_s12   ;;  %p1999_p10 = scmp.ne.s32.totalorder %s1986_s22, 0 }
 0x11a   : > { %s437_s30 = scalar_lea.vmem [#allocation12], %s436_s2 }
 0x11b   : > { %1144 = dma.done.wait (%p1999_p10), %s427_s16, 16  }
 0x11c   : > { %1146 = vsyncadd (%p1999_p10), %s427_s16, 4294967280  ;;  %s2000_s26 = sld [smem:[#allocation49_spill]]  ;;  %s2001_s11 = sld [smem:[#allocation36_spill]]  ;;  %v501_v1 = vld [vmem:[%s405_s8] sm:$0x1] }
 0x11d   : > { %v503_v2 = vld [vmem:[%s413_s6] sm:$0x1]  ;;  %s1229_s7 = smov [#allocation13]   ;;  %p719_p11 = scmp.eq.s32.totalorder %s1371_s28, 7 }
 0x11e   : > { %v505_v4 = vld [vmem:[%s421_s24] sm:$0x1]  ;;  %s522_s9 = sshll.u32 %s1229_s7, 4  ;;  %s523_s9 = int_to_ptr.vmem [resolvable:$true] %s522_s9 }
 0x11f   : > { %v507_v6 = vld [vmem:[%s429_s25] sm:$0x1]  ;;  %s1027_s13 = scalar_lea.vmem %s523_s9, 128  ;;  %p1034_p6 = scmp.lt.s32.totalorder %s523_s9, %s523_s9 }
 0x120   : > { %v509_v8 = vld [vmem:[%s437_s30] sm:$0x1]  ;;  %p1028_p8 = scmp.ne.s32.totalorder %s523_s9, %s1027_s13  ;;  %p1035_p4 = scmp.lt.s32.totalorder %s1027_s13, %s1027_s13 }
 0x122   : > { %v500_v0 = vld [vmem:[%s2000_s26] sm:$0x1]  ;;  %s511_s22 = scalar_lea.vmem [#allocation13], %s2001_s11  ;;  %p1029_p5 = pnand %p1028_p8, %p719_p11 }
 0x123   : > { %v502_v3 = vadd.f32 %v501_v1, %v500_v0  ;;  %p1036_p2 = por %p1035_p4, %p1034_p6 }
 0x124   : > { %p1030_p0 = pneg %p1029_p5 }
 0x125   : > { %v504_v5 = vadd.f32 %v503_v2, %v502_v3 }
 0x126   : > { %p1037_p7 = pnand %p1036_p2, %p1030_p0 }
 0x127   : > { %v506_v7 = vadd.f32 %v505_v4, %v504_v5 }
 0x129   : > { %v508_v9 = vadd.f32 %v507_v6, %v506_v7 }
 0x12b   : > { %v510_v10 = vadd.f32 %v509_v8, %v508_v9 }
 0x12d   : > { %512 = vst [vmem:[%s511_s22] sm:$0x1] %v510_v10 }
 0x12e   : > { %1040 = shalt.err (!%p1037_p7)
}
 0x12f   : > { %s2002_s5 = sld [smem:[#allocation50_spill]] }
 0x135   : > { %s1041_s6 = scalar_lea.hbm %s2002_s5, 128 }
 0x136   : > { %p1042_p9 = scmp.ne.s32.totalorder %s2002_s5, %s1041_s6  ;;  %p1047_p1 = scmp.lt.u32.totalorder %s1041_s6, %s2002_s5 }
 0x138   : > { %p1043_p3 = pnand %p1042_p9, %p719_p11 }
 0x13a   : > { %p1044_p12 = pneg %p1043_p3 }
 0x13c   : > { %p1049_p13 = pnand %p1047_p1, %p1044_p12 }
 0x13e   : > { %1052 = shalt.err (!%p1049_p13)
}
 0x13f   : > { %689 = dma.vmem_to_hbm [thread:$0]  (%p719_p11), %s523_s9, 128, %s2002_s5, [#allocation6]  }
 0x140   : > { %1148 = dma.done.wait (%p719_p11), [#allocation6], 128  }
 0x141   : > { %1150 = vsyncadd (%p719_p11), [#allocation6], 4294967168 }
 0x142 PF: > { %s31_s27 = sadd.s32 1, %s1221_s27   ;;  %s2004_s21 = sld [smem:[#allocation32_spill]] }
 0x143   : > { %p1836_p10 = scmp.ge.s32.totalorder %s31_s27, 10   ;;  %s2005_s29 = smov %s1492_s14 }
 0x144   : > { %s2006_s26 = sld [smem:[#allocation43_spill]]  ;;  %s2007_s7 = sld [smem:[#allocation33_spill]] }
 0x145   : > { %s2008_s20 = sld [smem:[#allocation34_spill]]  ;;  %s2009_s28 = sld [smem:[#allocation40_spill]] }
 0x146   : > { %s2010_s9 = sld [smem:[#allocation35_spill]]  ;;  %s2011_s24 = sld [smem:[#allocation42_spill]] }
 0x147   : > { %s2012_s25 = sld [smem:[#allocation37_spill]]  ;;  %s2013_s11 = smov %s1157_s12 }
 0x148   : > { %s2014_s8 = sld [smem:[#allocation38_spill]]  ;;  %s2015_s12 = smov %s2004_s21 }
 0x149   : > { %s2016_s13 = smov %s2053_s19  ;;  %s2017_s14 = smov %s1169_s15 }
 0x14a   : > { %s2018_s15 = smov %s1173_s0  ;;  %s2019_s0 = smov %s2005_s29 }
 0x14b   : > { %s2020_s16 = smov %s1181_s17  ;;  %s2021_s17 = smov %s1185_s18 }
 0x14c   : > { %s2022_s18 = smov %s2006_s26  ;;  %s2023_s19 = smov %s2007_s7 }
 0x14d   : > { %s2024_s21 = smov %s2009_s28  ;;  %s2025_s22 = smov %s1205_s23 }
 0x14e   : > { %s2026_s23 = smov %s2010_s9  ;;  %s2027_s26 = smov %s2014_s8 }
 0x14f   :  { %30 = sbr.rel (!%p1836_p10) target bundleno = 29 (0x1d), region = 131 }
 0x156   :  { %535 = vsyncpa [#allocation5], 1 }
 0x157   :  { %537 = vsyncpa [#allocation5 + $0x1], 1 }
 0x158   :  { %538 = vsyncpa [#allocation8], 1 }
 0x159   :  { %540 = vsyncpa [#allocation8 + $0x1], 1 }
 0x15a   :  { %541 = vsyncpa [#allocation11], 1 }
 0x15b   :  { %543 = vsyncpa [#allocation11 + $0x1], 1 }
 0x15c   :  { %544 = vsyncpa [#allocation6], 1 }
 0x15d   :  { %546 = vsyncpa [#allocation6 + $0x1], 1 }

</bundles_post_ra>
